<compile_context>
chip_gen: v5e
topology: v5e:2x2
jax: 0.10.0
libtpu: 0.0.40
codegen_flags: <defaults>
</compile_context>

<pallas_src>
import jax
import jax.numpy as jnp
from jax import lax
from jax.experimental import pallas as pl
from jax.experimental.pallas import tpu as pltpu


def _round_up(x, m):
    return (x + m - 1) // m * m


def _cdiv(a, b):
    return (a + b - 1) // b


def _pad2(a, rows, cols):
    return jnp.pad(a, ((0, rows - a.shape[0]), (0, cols - a.shape[1])))


def deepmil_kernel(kv_ref,                                     # scalar prefetch: real K
                   x_ref, wp_ref, bp_ref, wa1_ref, ba1_ref, wa2_ref, ba2_ref,
                   wg_ref, bg_ref,
                   logit_ref, scores_ref,
                   m_sc, l_sc, acc_sc):
    k = pl.program_id(0)
    k_tile = x_ref.shape[0]
    k_valid = kv_ref[0]

    # ---- init online-softmax accumulators at the first K tile ----
    @pl.when(k == 0)
    def _():
        m_sc[...] = jnp.full((1, 1), -jnp.inf, jnp.float32)
        l_sc[...] = jnp.zeros((1, 1), jnp.float32)
        acc_sc[...] = jnp.zeros(acc_sc.shape, jnp.float32)

    # Streamed X tile, cast in-register to the MXU compute dtype (no wrapper copies).
    X = x_ref[...].astype(wp_ref.dtype)                        # [Kt, d]

    # ---- Feat_Projecter: Linear + ReLU (MXU in compute dtype, f32 accumulate) ----
    Xp = jnp.dot(X, wp_ref[...], preferred_element_type=jnp.float32) + bp_ref[...]
    Xp = jnp.maximum(Xp, 0.0)                                  # [Kt, d_pad]  f32

    # Zero rows beyond the real bag: the ragged last block may read OOB garbage
    # (possibly NaN/Inf) from HBM and 0*NaN would otherwise poison the pooled vector.
    row_valid = (k * k_tile +
                 lax.broadcasted_iota(jnp.int32, (k_tile, 1), 0)) < k_valid
    Xp = jnp.where(row_valid, Xp, 0.0)

    # ---- Attention MLP: H = tanh(Xp @ wa1 + ba1); lane-major scores on the MXU ----
    H = jnp.tanh(jnp.dot(Xp.astype(wa1_ref.dtype), wa1_ref[...],
                         preferred_element_type=jnp.float32) + ba1_ref[...])   # [Kt, h]
    # a_row[1, Kt] = wa2[1, h] . H[Kt, h]^T  (contract h)  -> lane-dense scores, no column.
    a_row = jnp.einsum('oh,kh->ok', wa2_ref[...], H,
                       preferred_element_type=jnp.float32) + ba2_ref[...]       # [1, Kt]

    # Mask padded / out-of-bag lanes (finite sentinel; exp underflows to 0, no NaN).
    col_valid = (k * k_tile +
                 lax.broadcasted_iota(jnp.int32, (1, k_tile), 1)) < k_valid
    a_row = jnp.where(col_valid, a_row, -1e30)

    # Raw scores out, lane-dense; final softmax over the real K is wrapper plumbing.
    scores_ref[...] = a_row

    # ---- online softmax (lane-major stats) + MXU attention-weighted pooling ----
    m_prev = m_sc[...]                                         # [1, 1]
    m_new = jnp.maximum(m_prev, jnp.max(a_row, axis=1, keepdims=True))
    alpha = jnp.exp(m_prev - m_new)
    p_row = jnp.exp(a_row - m_new)                             # [1, Kt]
    l_sc[...] = alpha * l_sc[...] + jnp.sum(p_row, axis=1, keepdims=True)
    acc_sc[...] = alpha * acc_sc[...] + jnp.dot(
        p_row, Xp, preferred_element_type=jnp.float32)         # [1, d_pad] on the MXU
    m_sc[...] = m_new

    # ---- finalize: normalize pooled vector and run the classifier head ----
    @pl.when(k == pl.num_programs(0) - 1)
    def _():
        x_vec = acc_sc[...] * pl.reciprocal(l_sc[...], approx=False)   # [1, d_pad]
        logit_ref[...] = (jnp.dot(x_vec, wg_ref[...],
                                  preferred_element_type=jnp.float32) + bg_ref[...])


def deepmil_forward(X, params, compute_dtype=jnp.bfloat16, k_tile_max=1024):
    """X: [1, K, d].  Returns (logit [1, num_cls], attn [1, K]).

    compute_dtype: dtype of the MXU operands (X / wp / wa1); bf16 by default on every
      generation (the MXU is bf16-native on v5e/v6e/v7x); elementwise math stays f32.
      Pass jnp.float32 for bit-tight comparisons against an f32 reference.
    k_tile_max: upper bound on the K tile (multiple of 128).  On v7x (64 MiB VMEM,
      32 MiB scoped) use roughly half of the v5e/v6e value for d ~ 1024.
    """
    assert X.shape[0] == 1
    _, K, d = X.shape
    h = params["wa1"].shape[1]
    num_cls = params["wg"].shape[1]

    # lane padding (multiples of 128) for weight feature dims only; X is streamed as-is.
    d_pad = _round_up(d, 128)
    h_pad = _round_up(h, 128)
    c_pad = _round_up(num_cls, 128)

    # Balanced K tiles: single tile for small bags, else even 128-multiple tiles.
    if K <= k_tile_max:
        K_TILE = K
        num_tiles = 1
    else:
        nt = _cdiv(K, k_tile_max)
        K_TILE = min(_round_up(_cdiv(K, nt), 128), _round_up(k_tile_max, 128))
        num_tiles = _cdiv(K, K_TILE)

    f32 = jnp.float32
    x2d = X[0]                                                 # [K, d]  no pad / no cast copy
    wp = _pad2(params["wp"], d, d_pad).astype(compute_dtype)
    bp = _pad2(params["bp"], 1, d_pad).astype(f32)
    wa1 = _pad2(params["wa1"], d_pad, h_pad).astype(compute_dtype)
    ba1 = _pad2(params["ba1"], 1, h_pad).astype(f32)
    wa2 = _pad2(params["wa2"].T, 1, h_pad).astype(f32)         # row vector
    ba2 = params["ba2"].astype(f32)                            # [1, 1]
    wg = _pad2(params["wg"], d_pad, c_pad).astype(f32)
    bg = _pad2(params["bg"], 1, c_pad).astype(f32)

    k_valid = jnp.array([K], jnp.int32)                        # scalar-prefetch arg

    # Explicit VMEM budget: double-buffered X tiles + resident weights + intermediates.
    cd = jnp.dtype(compute_dtype).itemsize
    est = (2 * K_TILE * d * jnp.dtype(X.dtype).itemsize        # X blocks
           + 2 * K_TILE * 4                                    # score blocks
           + 2 * (d * d_pad * cd + d_pad * h_pad * cd + d_pad * c_pad * 4
                  + (2 * d_pad + 2 * h_pad + c_pad + 1) * 4)   # weights + biases
           + (d_pad + 2) * 4                                   # scratch
           + 4 * K_TILE * max(d_pad, h_pad) * 4)               # Xp / H intermediates
    vmem_limit = int(min(64 * 1024 * 1024, max(16 * 1024 * 1024, est)))

    logit_pad, scores = pl.pallas_call(
        deepmil_kernel,
        out_shape=(
            jax.ShapeDtypeStruct((1, c_pad), f32),
            jax.ShapeDtypeStruct((1, num_tiles * K_TILE), f32),
        ),
        grid_spec=pltpu.PrefetchScalarGridSpec(
            num_scalar_prefetch=1,
            grid=(num_tiles,),
            in_specs=[
                pl.BlockSpec((K_TILE, d), lambda k, kv: (k, 0)),      # X streamed over K
                pl.BlockSpec((d, d_pad), lambda k, kv: (0, 0)),       # wp (resident)
                pl.BlockSpec((1, d_pad), lambda k, kv: (0, 0)),       # bp
                pl.BlockSpec((d_pad, h_pad), lambda k, kv: (0, 0)),   # wa1 (resident)
                pl.BlockSpec((1, h_pad), lambda k, kv: (0, 0)),       # ba1
                pl.BlockSpec((1, h_pad), lambda k, kv: (0, 0)),       # wa2 row
                pl.BlockSpec((1, 1), lambda k, kv: (0, 0)),           # ba2
                pl.BlockSpec((d_pad, c_pad), lambda k, kv: (0, 0)),   # wg
                pl.BlockSpec((1, c_pad), lambda k, kv: (0, 0)),       # bg
            ],
            out_specs=(
                pl.BlockSpec((1, c_pad), lambda k, kv: (0, 0)),       # logit (last step)
                pl.BlockSpec((1, K_TILE), lambda k, kv: (0, k)),      # lane-dense scores
            ),
            scratch_shapes=[
                pltpu.VMEM((1, 1), f32),        # running max m
                pltpu.VMEM((1, 1), f32),        # running sum l
                pltpu.VMEM((1, d_pad), f32),    # running pooled acc
            ],
        ),
        compiler_params=pltpu.CompilerParams(
            dimension_semantics=("arbitrary",),   # K is a reduction axis
            vmem_limit_bytes=vmem_limit,
        ),
    )(k_valid, x2d, wp, bp, wa1, ba1, wa2, ba2, wg, bg)

    logit = logit_pad[:, :num_cls]
    attn = jax.nn.softmax(scores[0, :K]).reshape(1, K)
    return logit, attn


def init_params(key, dim_in, dim_hid, num_cls):
    """Deterministic init mirroring nn.Linear default (uniform +-1/sqrt(fan_in)).
    Weights stored [in, out]; biases stored [1, out]."""
    ks = jax.random.split(key, 8)

    def lin(kw, kb, fan_in, fan_out):
        bound = 1.0 / jnp.sqrt(fan_in)
        w = jax.random.uniform(kw, (fan_in, fan_out), jnp.float32, -bound, bound)
        b = jax.random.uniform(kb, (1, fan_out), jnp.float32, -bound, bound)
        return w, b

    wp, bp = lin(ks[0], ks[1], dim_in, dim_in)       # Feat_Projecter
    wa1, ba1 = lin(ks[2], ks[3], dim_in, dim_hid)    # attention layer 1
    wa2, ba2 = lin(ks[4], ks[5], dim_hid, 1)         # attention layer 2
    wg, bg = lin(ks[6], ks[7], dim_in, num_cls)      # classifier g
    return dict(wp=wp, bp=bp, wa1=wa1, ba1=ba1, wa2=wa2, ba2=ba2, wg=wg, bg=bg)


def deepmil_reference(X, p):
    """Pure-JAX f32 reference for correctness checking."""
    x = X[0].astype(jnp.float32)
    xp = jnp.maximum(x @ p["wp"] + p["bp"], 0.0)
    h = jnp.tanh(xp @ p["wa1"] + p["ba1"])
    a = h @ p["wa2"] + p["ba2"]
    attn = jax.nn.softmax(a, axis=0)
    x_vec = jnp.sum(attn * xp, axis=0, keepdims=True)
    return x_vec @ p["wg"] + p["bg"], attn.reshape(1, -1)


if __name__ == "__main__":
    dim_in, dim_hid, num_cls = 32, 32, 2

    # --- small bag: single grid step ---
    K = 8
    k_x, k_p = jax.random.split(jax.random.PRNGKey(0))
    X = jax.random.normal(k_x, (1, K, dim_in), jnp.float32)
    params = init_params(k_p, dim_in, dim_hid, num_cls)
    logit_ref, attn_ref = deepmil_reference(X, params)

    # f32 compute path (tight tolerance)
    logit_f, attn_f = jax.block_until_ready(
        deepmil_forward(X, params, compute_dtype=jnp.float32))
    assert logit_f.shape == (1, num_cls) and attn_f.shape == (1, K)
    assert jnp.allclose(logit_f, logit_ref, atol=1e-4, rtol=1e-4)
    assert jnp.allclose(attn_f, attn_ref, atol=1e-5, rtol=1e-4)

    # default bf16 MXU operands (f32 elementwise / accumulate)
    logit_b, attn_b = jax.block_until_ready(deepmil_forward(X, params))
    assert jnp.allclose(logit_b, logit_ref, atol=5e-2, rtol=5e-2)
    assert jnp.allclose(attn_b, attn_ref, atol=5e-3, rtol=5e-2)

    # --- larger bag: multi-tile streaming, online softmax, ragged last tile masking ---
    K2 = 601
    k_x2, k_p2 = jax.random.split(jax.random.PRNGKey(1))
    X2 = jax.random.normal(k_x2, (1, K2, dim_in), jnp.float32)
    params2 = init_params(k_p2, dim_in, dim_hid, num_cls)
    logit2_ref, attn2_ref = deepmil_reference(X2, params2)

    logit2_f, attn2_f = jax.block_until_ready(
        deepmil_forward(X2, params2, compute_dtype=jnp.float32, k_tile_max=256))
    assert logit2_f.shape == (1, num_cls) and attn2_f.shape == (1, K2)
    assert jnp.allclose(logit2_f, logit2_ref, atol=1e-4, rtol=1e-4)
    assert jnp.allclose(attn2_f, attn2_ref, atol=1e-5, rtol=1e-4)

    logit2_b, attn2_b = jax.block_until_ready(
        deepmil_forward(X2, params2, k_tile_max=256))          # bf16 default
    assert jnp.allclose(logit2_b, logit2_ref, atol=5e-2, rtol=5e-2)
    assert jnp.allclose(attn2_b, attn2_ref, atol=5e-3, rtol=5e-2)

    print("KERNEL_OK")
</pallas_src>

<mosaic_0001>
module attributes {stable_mosaic.version = 11 : i64} {
  func.func @deepmil_kernel(%arg0: i32, %arg1: memref<1xi32, #tpu.memory_space<smem>>, %arg2: memref<8x32xf32, #tpu.memory_space<vmem>>, %arg3: memref<32x128xf32, #tpu.memory_space<vmem>>, %arg4: memref<1x128xf32, #tpu.memory_space<vmem>>, %arg5: memref<128x128xf32, #tpu.memory_space<vmem>>, %arg6: memref<1x128xf32, #tpu.memory_space<vmem>>, %arg7: memref<1x128xf32, #tpu.memory_space<vmem>>, %arg8: memref<1x1xf32, #tpu.memory_space<vmem>>, %arg9: memref<128x128xf32, #tpu.memory_space<vmem>>, %arg10: memref<1x128xf32, #tpu.memory_space<vmem>>, %arg11: memref<1x128xf32, #tpu.memory_space<vmem>>, %arg12: memref<1x8xf32, #tpu.memory_space<vmem>>, %arg13: memref<1x1xf32, #tpu.memory_space<vmem>>, %arg14: memref<1x1xf32, #tpu.memory_space<vmem>>, %arg15: memref<1x128xf32, #tpu.memory_space<vmem>>) attributes {dimension_semantics = [#tpu.dimension_semantics<arbitrary>], iteration_bounds = array<i64: 1>, scalar_prefetch = 1 : i64, scratch_operands = 3 : i64, tpu.core_type = #tpu.core_type<tc>, window_params = [{transform_indices = @transform_0, window_bounds = array<i64: 8, 32>}, {pipeline_mode = #tpu.pipeline_mode<synchronous>, transform_indices = @transform_1, window_bounds = array<i64: 32, 128>}, {pipeline_mode = #tpu.pipeline_mode<synchronous>, transform_indices = @transform_2, window_bounds = array<i64: 1, 128>}, {pipeline_mode = #tpu.pipeline_mode<synchronous>, transform_indices = @transform_3, window_bounds = array<i64: 128, 128>}, {pipeline_mode = #tpu.pipeline_mode<synchronous>, transform_indices = @transform_4, window_bounds = array<i64: 1, 128>}, {pipeline_mode = #tpu.pipeline_mode<synchronous>, transform_indices = @transform_5, window_bounds = array<i64: 1, 128>}, {pipeline_mode = #tpu.pipeline_mode<synchronous>, transform_indices = @transform_6, window_bounds = array<i64: 1, 1>}, {pipeline_mode = #tpu.pipeline_mode<synchronous>, transform_indices = @transform_7, window_bounds = array<i64: 128, 128>}, {pipeline_mode = #tpu.pipeline_mode<synchronous>, transform_indices = @transform_8, window_bounds = array<i64: 1, 128>}, {pipeline_mode = #tpu.pipeline_mode<synchronous>, transform_indices = @transform_9, window_bounds = array<i64: 1, 128>}, {transform_indices = @transform_10, window_bounds = array<i64: 1, 8>}]} {
    %c0 = arith.constant 0 : index
    %0 = memref.load %arg1[%c0] : memref<1xi32, #tpu.memory_space<smem>>
    %c0_i32 = arith.constant 0 : i32
    %1 = arith.cmpi eq, %arg0, %c0_i32 : i32
    %2 = arith.extui %1 : i1 to i32
    %c0_i32_0 = arith.constant 0 : i32
    %3 = arith.cmpi ne, %2, %c0_i32_0 : i32
    scf.if %3 {
      %cst_40 = arith.constant 0xFF800000 : f32
      %67 = vector.broadcast %cst_40 : f32 to vector<1x1xf32>
      %c0_41 = arith.constant 0 : index
      %c0_42 = arith.constant 0 : index
      %68 = vector.load %arg13[%c0_41, %c0_42] : memref<1x1xf32, #tpu.memory_space<vmem>>, vector<1x1xf32>
      tpu.vector_store %arg13[%c0_41, %c0_42], %67 {strides = array<i32>} : memref<1x1xf32, #tpu.memory_space<vmem>>, vector<1x1xf32>,
      %cst_43 = arith.constant 0.000000e+00 : f32
      %69 = vector.broadcast %cst_43 : f32 to vector<1x1xf32>
      %c0_44 = arith.constant 0 : index
      %c0_45 = arith.constant 0 : index
      %70 = vector.load %arg14[%c0_44, %c0_45] : memref<1x1xf32, #tpu.memory_space<vmem>>, vector<1x1xf32>
      tpu.vector_store %arg14[%c0_44, %c0_45], %69 {strides = array<i32>} : memref<1x1xf32, #tpu.memory_space<vmem>>, vector<1x1xf32>,
      %cst_46 = arith.constant 0.000000e+00 : f32
      %71 = vector.broadcast %cst_46 : f32 to vector<1x128xf32>
      %c0_47 = arith.constant 0 : index
      %c0_48 = arith.constant 0 : index
      %72 = vector.load %arg15[%c0_47, %c0_48] : memref<1x128xf32, #tpu.memory_space<vmem>>, vector<1x128xf32>
      tpu.vector_store %arg15[%c0_47, %c0_48], %71 {strides = array<i32>} : memref<1x128xf32, #tpu.memory_space<vmem>>, vector<1x128xf32>,
    } else {
    }
    %c0_1 = arith.constant 0 : index
    %c0_2 = arith.constant 0 : index
    %4 = vector.load %arg2[%c0_1, %c0_2] : memref<8x32xf32, #tpu.memory_space<vmem>>, vector<8x32xf32>
    %c0_3 = arith.constant 0 : index
    %c0_4 = arith.constant 0 : index
    %5 = vector.load %arg3[%c0_3, %c0_4] : memref<32x128xf32, #tpu.memory_space<vmem>>, vector<32x128xf32>
    %cst = arith.constant dense<0.000000e+00> : vector<8x128xf32>
    %6 = tpu.matmul %4, %5, %cst {dimension_numbers = #tpu.dot_dimension_numbers<[1], [0], [0], [1], [0, 0, 1, 1], [], []>} : vector<8x32xf32>, vector<32x128xf32>, vector<8x128xf32> -> vector<8x128xf32>
    %c0_5 = arith.constant 0 : index
    %c0_6 = arith.constant 0 : index
    %7 = vector.load %arg4[%c0_5, %c0_6] : memref<1x128xf32, #tpu.memory_space<vmem>>, vector<1x128xf32>
    %8 = vector.broadcast %7 : vector<1x128xf32> to vector<8x128xf32>
    %9 = arith.addf %6, %8 : vector<8x128xf32>
    %cst_7 = arith.constant 0.000000e+00 : f32
    %10 = vector.broadcast %cst_7 : f32 to vector<8x128xf32>
    %11 = arith.maximumf %9, %10 : vector<8x128xf32>
    %c8_i32 = arith.constant 8 : i32
    %12 = arith.muli %arg0, %c8_i32 : i32
    %13 = tpu.iota {dimensions = array<i32: 0>} : vector<8x1xi32>
    %14 = vector.broadcast %12 : i32 to vector<8x1xi32>
    %15 = arith.addi %14, %13 : vector<8x1xi32>
    %16 = vector.broadcast %0 : i32 to vector<8x1xi32>
    %17 = arith.cmpi slt, %15, %16 : vector<8x1xi32>
    %cst_8 = arith.constant 0.000000e+00 : f32
    %18 = vector.shape_cast %17 : vector<8x1xi1> to vector<8x1xi1>
    %19 = vector.broadcast %18 : vector<8x1xi1> to vector<8x128xi1>
    %20 = vector.broadcast %cst_8 : f32 to vector<8x128xf32>
    %21 = arith.select %19, %11, %20 : vector<8x128xi1>, vector<8x128xf32>
    %c0_9 = arith.constant 0 : index
    %c0_10 = arith.constant 0 : index
    %22 = vector.load %arg5[%c0_9, %c0_10] : memref<128x128xf32, #tpu.memory_space<vmem>>, vector<128x128xf32>
    %cst_11 = arith.constant dense<0.000000e+00> : vector<8x128xf32>
    %23 = tpu.matmul %21, %22, %cst_11 {dimension_numbers = #tpu.dot_dimension_numbers<[1], [0], [0], [1], [0, 0, 1, 1], [], []>} : vector<8x128xf32>, vector<128x128xf32>, vector<8x128xf32> -> vector<8x128xf32>
    %c0_12 = arith.constant 0 : index
    %c0_13 = arith.constant 0 : index
    %24 = vector.load %arg6[%c0_12, %c0_13] : memref<1x128xf32, #tpu.memory_space<vmem>>, vector<1x128xf32>
    %25 = vector.broadcast %24 : vector<1x128xf32> to vector<8x128xf32>
    %26 = arith.addf %23, %25 : vector<8x128xf32>
    %27 = math.tanh %26 : vector<8x128xf32>
    %c0_14 = arith.constant 0 : index
    %c0_15 = arith.constant 0 : index
    %28 = vector.load %arg7[%c0_14, %c0_15] : memref<1x128xf32, #tpu.memory_space<vmem>>, vector<1x128xf32>
    "tpu.trace_start"() <{level = 10 : i32, message = "oh,kh->ok"}> : () -> ()
    %cst_16 = arith.constant dense<0.000000e+00> : vector<1x8xf32>
    %29 = tpu.matmul %28, %27, %cst_16 {dimension_numbers = #tpu.dot_dimension_numbers<[1], [1], [0], [0], [0, 0, 1, 0], [], []>} : vector<1x128xf32>, vector<8x128xf32>, vector<1x8xf32> -> vector<1x8xf32>
    "tpu.trace_stop"() : () -> ()
    %c0_17 = arith.constant 0 : index
    %c0_18 = arith.constant 0 : index
    %30 = vector.load %arg8[%c0_17, %c0_18] : memref<1x1xf32, #tpu.memory_space<vmem>>, vector<1x1xf32>
    %31 = vector.broadcast %30 : vector<1x1xf32> to vector<1x8xf32>
    %32 = arith.addf %29, %31 : vector<1x8xf32>
    %c8_i32_19 = arith.constant 8 : i32
    %33 = arith.muli %arg0, %c8_i32_19 : i32
    %34 = tpu.iota {dimensions = array<i32: 1>} : vector<1x8xi32>
    %35 = vector.broadcast %33 : i32 to vector<1x8xi32>
    %36 = arith.addi %35, %34 : vector<1x8xi32>
    %37 = vector.broadcast %0 : i32 to vector<1x8xi32>
    %38 = arith.cmpi slt, %36, %37 : vector<1x8xi32>
    %cst_20 = arith.constant -1.000000e+30 : f32
    %39 = vector.broadcast %cst_20 : f32 to vector<1x8xf32>
    %40 = arith.select %38, %32, %39 : vector<1x8xi1>, vector<1x8xf32>
    %c0_21 = arith.constant 0 : index
    %c0_22 = arith.constant 0 : index
    %41 = vector.load %arg12[%c0_21, %c0_22] : memref<1x8xf32, #tpu.memory_space<vmem>>, vector<1x8xf32>
    tpu.vector_store %arg12[%c0_21, %c0_22], %40 {strides = array<i32>} : memref<1x8xf32, #tpu.memory_space<vmem>>, vector<1x8xf32>,
    %c0_23 = arith.constant 0 : index
    %c0_24 = arith.constant 0 : index
    %42 = vector.load %arg13[%c0_23, %c0_24] : memref<1x1xf32, #tpu.memory_space<vmem>>, vector<1x1xf32>
    %cst_25 = arith.constant dense<0xFF800000> : vector<1xf32>
    %43 = vector.multi_reduction <maximumf>, %40, %cst_25 [1] : vector<1x8xf32> to vector<1xf32>
    %44 = vector.shape_cast %43 : vector<1xf32> to vector<1x1xf32>
    %45 = arith.maximumf %42, %44 : vector<1x1xf32>
    %46 = arith.subf %42, %45 : vector<1x1xf32>
    %47 = math.exp %46 : vector<1x1xf32>
    %48 = vector.broadcast %45 : vector<1x1xf32> to vector<1x8xf32>
    %49 = arith.subf %40, %48 : vector<1x8xf32>
    %50 = math.exp %49 : vector<1x8xf32>
    %c0_26 = arith.constant 0 : index
    %c0_27 = arith.constant 0 : index
    %51 = vector.load %arg14[%c0_26, %c0_27] : memref<1x1xf32, #tpu.memory_space<vmem>>, vector<1x1xf32>
    %52 = arith.mulf %47, %51 : vector<1x1xf32>
    %cst_28 = arith.constant dense<0.000000e+00> : vector<1xf32>
    %53 = vector.multi_reduction <add>, %50, %cst_28 [1] : vector<1x8xf32> to vector<1xf32>
    %54 = vector.shape_cast %53 : vector<1xf32> to vector<1x1xf32>
    %55 = arith.addf %52, %54 : vector<1x1xf32>
    %c0_29 = arith.constant 0 : index
    %c0_30 = arith.constant 0 : index
    %56 = vector.load %arg14[%c0_29, %c0_30] : memref<1x1xf32, #tpu.memory_space<vmem>>, vector<1x1xf32>
    tpu.vector_store %arg14[%c0_29, %c0_30], %55 {strides = array<i32>} : memref<1x1xf32, #tpu.memory_space<vmem>>, vector<1x1xf32>,
    %c0_31 = arith.constant 0 : index
    %c0_32 = arith.constant 0 : index
    %57 = vector.load %arg15[%c0_31, %c0_32] : memref<1x128xf32, #tpu.memory_space<vmem>>, vector<1x128xf32>
    %58 = vector.broadcast %47 : vector<1x1xf32> to vector<1x128xf32>
    %59 = arith.mulf %58, %57 : vector<1x128xf32>
    %cst_33 = arith.constant dense<0.000000e+00> : vector<1x128xf32>
    %60 = tpu.matmul %50, %21, %cst_33 {dimension_numbers = #tpu.dot_dimension_numbers<[1], [0], [0], [1], [0, 0, 1, 1], [], []>} : vector<1x8xf32>, vector<8x128xf32>, vector<1x128xf32> -> vector<1x128xf32>
    %61 = arith.addf %59, %60 : vector<1x128xf32>
    %c0_34 = arith.constant 0 : index
    %c0_35 = arith.constant 0 : index
    %62 = vector.load %arg15[%c0_34, %c0_35] : memref<1x128xf32, #tpu.memory_space<vmem>>, vector<1x128xf32>
    tpu.vector_store %arg15[%c0_34, %c0_35], %61 {strides = array<i32>} : memref<1x128xf32, #tpu.memory_space<vmem>>, vector<1x128xf32>,
    %c0_36 = arith.constant 0 : index
    %c0_37 = arith.constant 0 : index
    %63 = vector.load %arg13[%c0_36, %c0_37] : memref<1x1xf32, #tpu.memory_space<vmem>>, vector<1x1xf32>
    tpu.vector_store %arg13[%c0_36, %c0_37], %45 {strides = array<i32>} : memref<1x1xf32, #tpu.memory_space<vmem>>, vector<1x1xf32>,
    %c0_i32_38 = arith.constant 0 : i32
    %64 = arith.cmpi eq, %arg0, %c0_i32_38 : i32
    %65 = arith.extui %64 : i1 to i32
    %c0_i32_39 = arith.constant 0 : i32
    %66 = arith.cmpi ne, %65, %c0_i32_39 : i32
    scf.if %66 {
      %c0_40 = arith.constant 0 : index
      %c0_41 = arith.constant 0 : index
      %67 = vector.load %arg15[%c0_40, %c0_41] : memref<1x128xf32, #tpu.memory_space<vmem>>, vector<1x128xf32>
      %c0_42 = arith.constant 0 : index
      %c0_43 = arith.constant 0 : index
      %68 = vector.load %arg14[%c0_42, %c0_43] : memref<1x1xf32, #tpu.memory_space<vmem>>, vector<1x1xf32>
      %69 = tpu.reciprocal %68 : vector<1x1xf32> -> vector<1x1xf32>
      %70 = vector.broadcast %69 : vector<1x1xf32> to vector<1x128xf32>
      %71 = arith.mulf %67, %70 : vector<1x128xf32>
      %c0_44 = arith.constant 0 : index
      %c0_45 = arith.constant 0 : index
      %72 = vector.load %arg9[%c0_44, %c0_45] : memref<128x128xf32, #tpu.memory_space<vmem>>, vector<128x128xf32>
      %cst_46 = arith.constant dense<0.000000e+00> : vector<1x128xf32>
      %73 = tpu.matmul %71, %72, %cst_46 {dimension_numbers = #tpu.dot_dimension_numbers<[1], [0], [0], [1], [0, 0, 1, 1], [], []>} : vector<1x128xf32>, vector<128x128xf32>, vector<1x128xf32> -> vector<1x128xf32>
      %c0_47 = arith.constant 0 : index
      %c0_48 = arith.constant 0 : index
      %74 = vector.load %arg10[%c0_47, %c0_48] : memref<1x128xf32, #tpu.memory_space<vmem>>, vector<1x128xf32>
      %75 = arith.addf %73, %74 : vector<1x128xf32>
      %c0_49 = arith.constant 0 : index
      %c0_50 = arith.constant 0 : index
      %76 = vector.load %arg11[%c0_49, %c0_50] : memref<1x128xf32, #tpu.memory_space<vmem>>, vector<1x128xf32>
      tpu.vector_store %arg11[%c0_49, %c0_50], %75 {strides = array<i32>} : memref<1x128xf32, #tpu.memory_space<vmem>>, vector<1x128xf32>,
    } else {
    }
    return
  }
  func.func @transform_0(%arg0: i32, %arg1: memref<1xi32, #tpu.memory_space<smem>>) -> (i32, i32) {
    %c0_i32 = arith.constant 0 : i32
    %c0_i32_0 = arith.constant 0 : i32
    return %arg0, %c0_i32 : i32, i32
  }
  func.func @transform_1(%arg0: i32, %arg1: memref<1xi32, #tpu.memory_space<smem>>) -> (i32, i32) {
    %c0_i32 = arith.constant 0 : i32
    %c0_i32_0 = arith.constant 0 : i32
    %c0_i32_1 = arith.constant 0 : i32
    return %c0_i32, %c0_i32_0 : i32, i32
  }
  func.func @transform_2(%arg0: i32, %arg1: memref<1xi32, #tpu.memory_space<smem>>) -> (i32, i32) {
    %c0_i32 = arith.constant 0 : i32
    %c0_i32_0 = arith.constant 0 : i32
    %c0_i32_1 = arith.constant 0 : i32
    return %c0_i32, %c0_i32_0 : i32, i32
  }
  func.func @transform_3(%arg0: i32, %arg1: memref<1xi32, #tpu.memory_space<smem>>) -> (i32, i32) {
    %c0_i32 = arith.constant 0 : i32
    %c0_i32_0 = arith.constant 0 : i32
    %c0_i32_1 = arith.constant 0 : i32
    return %c0_i32, %c0_i32_0 : i32, i32
  }
  func.func @transform_4(%arg0: i32, %arg1: memref<1xi32, #tpu.memory_space<smem>>) -> (i32, i32) {
    %c0_i32 = arith.constant 0 : i32
    %c0_i32_0 = arith.constant 0 : i32
    %c0_i32_1 = arith.constant 0 : i32
    return %c0_i32, %c0_i32_0 : i32, i32
  }
  func.func @transform_5(%arg0: i32, %arg1: memref<1xi32, #tpu.memory_space<smem>>) -> (i32, i32) {
    %c0_i32 = arith.constant 0 : i32
    %c0_i32_0 = arith.constant 0 : i32
    %c0_i32_1 = arith.constant 0 : i32
    return %c0_i32, %c0_i32_0 : i32, i32
  }
  func.func @transform_6(%arg0: i32, %arg1: memref<1xi32, #tpu.memory_space<smem>>) -> (i32, i32) {
    %c0_i32 = arith.constant 0 : i32
    %c0_i32_0 = arith.constant 0 : i32
    %c0_i32_1 = arith.constant 0 : i32
    return %c0_i32, %c0_i32_0 : i32, i32
  }
  func.func @transform_7(%arg0: i32, %arg1: memref<1xi32, #tpu.memory_space<smem>>) -> (i32, i32) {
    %c0_i32 = arith.constant 0 : i32
    %c0_i32_0 = arith.constant 0 : i32
    %c0_i32_1 = arith.constant 0 : i32
    return %c0_i32, %c0_i32_0 : i32, i32
  }
  func.func @transform_8(%arg0: i32, %arg1: memref<1xi32, #tpu.memory_space<smem>>) -> (i32, i32) {
    %c0_i32 = arith.constant 0 : i32
    %c0_i32_0 = arith.constant 0 : i32
    %c0_i32_1 = arith.constant 0 : i32
    return %c0_i32, %c0_i32_0 : i32, i32
  }
  func.func @transform_9(%arg0: i32, %arg1: memref<1xi32, #tpu.memory_space<smem>>) -> (i32, i32) {
    %c0_i32 = arith.constant 0 : i32
    %c0_i32_0 = arith.constant 0 : i32
    %c0_i32_1 = arith.constant 0 : i32
    return %c0_i32, %c0_i32_0 : i32, i32
  }
  func.func @transform_10(%arg0: i32, %arg1: memref<1xi32, #tpu.memory_space<smem>>) -> (i32, i32) {
    %c0_i32 = arith.constant 0 : i32
    %c0_i32_0 = arith.constant 0 : i32
    return %c0_i32, %arg0 : i32, i32
  }
}

</mosaic_0001>

<bundles_post_ra>
// kernel: tpu_custom_call.1
= control target key start
LH: loop header
LB: loop body
LE: loop exit
PB: predicated region body
PF: predicated region fallthrough
CT: control target
= control target key end

     0   :  { %s693_s0 = inlined_call_operand.<no memory space> [shape: s32[1], index: 0, kind: input, shape index: {}]   ;;  %s694_s1 = inlined_call_operand.hbm [shape: f32[8,32], index: 1, kind: input, shape index: {}]   ;;  %s695_s2 = inlined_call_operand.hbm [shape: f32[32,128], index: 2, kind: input, shape index: {}]   ;;  %s696_s3 = inlined_call_operand.vmem [shape: f32[1,128], index: 3, kind: input, shape index: {}]   ;;  %s697_s4 = inlined_call_operand.hbm [shape: f32[128,128], index: 4, kind: input, shape index: {}]   ;;  %s698_s5 = inlined_call_operand.vmem [shape: f32[1,128], index: 5, kind: input, shape index: {}]   ;;  %s699_s6 = inlined_call_operand.vmem [shape: f32[1,128], index: 6, kind: input, shape index: {}]   ;;  %s700_s7 = inlined_call_operand.<no memory space> [shape: f32[1,1], index: 7, kind: input, shape index: {}]   ;;  %s701_s8 = inlined_call_operand.hbm [shape: f32[128,128], index: 8, kind: input, shape index: {}]   ;;  %s702_s9 = inlined_call_operand.vmem [shape: f32[1,128], index: 9, kind: input, shape index: {}]   ;;  %s703_s10 = inlined_call_operand.hbm [shape: f32[1,128], index: 10, kind: output, shape index: {0}]   ;;  %s704_s11 = inlined_call_operand.hbm [shape: f32[1,8], index: 11, kind: output, shape index: {1}]  }
   0x1   :  { %v18_v0 = vstv %s700_s7 }
   0x2   :  { %19 = vst [vmem:[#allocation7] sm:$0x1] %v18_v0 }
   0x3   :  { %20 = vsyncpa [#allocation9], 0 }
   0x4   :  { %21 = vsyncpa [#allocation12], 0 }
   0x5   :  { %22 = vsyncpa [#allocation15], 0 }
   0x6   :  { %23 = vsyncpa [#allocation10], 0  ;;  %s40_s21 = sshll.u32 %s695_s2, 4  ;;  %s41_s21 = int_to_ptr.hbm [resolvable:$true] %s40_s21 }
   0x7   :  { %24 = vsyncpa [#allocation18], 0  ;;  %s571_s22 = smov [#allocation11]   ;;  %s30_s26 = sshll.u32 %s694_s1, 4  ;;  %s31_s26 = int_to_ptr.hbm [resolvable:$true] %s30_s26 }
   0x8   :  { %s42_s23 = sshll.u32 %s571_s22, 4  ;;  %s572_s27 = smov 128   ;;  %s43_s23 = int_to_ptr.vmem [resolvable:$true] %s42_s23 }
   0x9   :  { %s573_s7 = smov 8   ;;  %s574_s28 = smov [#allocation8]  }
   0xa   :  { %48 = dma.hbm_to_vmem [thread:$0]  %s41_s21, 512, %s43_s23, [#allocation12], %s572_s27, %s572_s27, %s573_s7  }
   0xb   :  { %s32_s29 = sshll.u32 %s574_s28, 4  ;;  %s55_s13 = sshll.u32 %s697_s4, 4  ;;  %s33_s29 = int_to_ptr.vmem [resolvable:$true] %s32_s29  ;;  %s56_s13 = int_to_ptr.hbm [resolvable:$true] %s55_s13 }
   0xc   :  { %35 = dma.hbm_to_vmem [thread:$0]  %s31_s26, 128, %s33_s29, [#allocation9]  }
   0xd   :  { %s74_s15 = sshll.u32 %s701_s8, 4  ;;  %s575_s16 = smov [#allocation13]   ;;  %s75_s15 = int_to_ptr.hbm [resolvable:$true] %s74_s15 }
   0xe   :  { %s57_s17 = sshll.u32 %s575_s16, 4  ;;  %s576_s1 = smov [#allocation14]   ;;  %s58_s17 = int_to_ptr.vmem [resolvable:$true] %s57_s17 }
   0xf   :  { %63 = dma.hbm_to_vmem [thread:$0]  %s56_s13, 2048, %s58_s17, [#allocation12], %s572_s27, %s572_s27, %s573_s7  }
  0x10   :  { %s76_s18 = sshll.u32 %s576_s1, 4  ;;  %s77_s18 = int_to_ptr.vmem [resolvable:$true] %s76_s18 }
  0x11   :  { %82 = dma.hbm_to_vmem [thread:$0]  %s75_s15, 2048, %s77_s18, [#allocation15], %s572_s27, %s572_s27, %s573_s7  }
  0x12   :  { %561 = dma.done.wait [#allocation9], 128  }
  0x13   :  { %562 = vsyncadd [#allocation9], 4294967168 }
  0x14   :  { %563 = dma.done.wait [#allocation12], 2560  }
  0x15   :  { %564 = vsyncadd [#allocation12], 4294964736 }
  0x16   :  { %565 = dma.done.wait [#allocation15], 2048  }
  0x17   :  { %566 = vsyncadd [#allocation15], 4294965248  ;;  %v114_v1 = vld [vmem:[#allocation11 + $0x18] sm:$0xff]  ;;  %v113_v2 = vld [vmem:[#allocation11 + $0x10] sm:$0xff]  ;;  %vm119_vm0 = vcmask 261120   ;;  %v145_v22 = vlaneseq  ;;  %v149_v25 = vstv %s693_s0  ;;  %v577_v31 = vmov 0  }
  0x18   :  { %135 = vmatpush.msra.mxu0 %v114_v1  ;;  %v169_v3 = vld [vmem:[#allocation13 + $0x78] sm:$0xff]  ;;  %v112_v4 = vld [vmem:[#allocation11 + $0x8] sm:$0xff]  ;;  %v168_v5 = vld [vmem:[#allocation13 + $0x70] sm:$0xff]  ;;  %404 = vset.pattern.permute.xlu0 %v577_v31  ;;  %vm106_vm2 = vcmask 0   ;;  %v578_v37 = vmov -inf   ;;  %vm228_vm4 = vcmask 57344  }
  0x19   :  { %174 = vmatpush.msra.mxu1 %v169_v3  ;;  %v167_v6 = vld [vmem:[#allocation13 + $0x68] sm:$0xff]  ;;  %v111_v7 = vld [vmem:[#allocation11] sm:$0xff]  ;;  %v110_v8 = vld [vmem:[#allocation8] sm:$0xff]  ;;  %v146_v24 = vshrl.u32 %v145_v22, 7  ;;  %405 = vset.pattern.permute.xlu1 %v577_v31  ;;  %107 = vst.msk [vmem:[#allocation2] sm:$0x1] %vm106_vm2, %v578_v37 }
  0x1a   :  { %136 = vmatpush.msra.mxu0 %v113_v2  ;;  %v166_v9 = vld [vmem:[#allocation13 + $0x60] sm:$0xff]  ;;  %v165_v10 = vld [vmem:[#allocation13 + $0x58] sm:$0xff]  ;;  %v164_v11 = vld [vmem:[#allocation13 + $0x50] sm:$0xff]  ;;  %406 = vset.pattern.permute.xlu2 %v577_v31  ;;  %v224_v39 = vand.u32 127, %v145_v22  ;;  %v579_v45 = vmov 0.0   ;;  %vm263_vm5 = vcmask 64512  }
  0x1b   :  { %175 = vmatpush.msra.mxu1 %v168_v5  ;;  %v163_v12 = vld [vmem:[#allocation13 + $0x48] sm:$0xff]  ;;  %v162_v13 = vld [vmem:[#allocation13 + $0x40] sm:$0xff]  ;;  %v161_v14 = vld [vmem:[#allocation13 + $0x38] sm:$0xff]  ;;  %vm663_vm1 = vcmp.lt.s32.totalorder %v146_v24, %v149_v25  ;;  %108 = vst.msk [vmem:[#allocation3] sm:$0x1] %vm106_vm2, %v579_v45  ;;  %s372_s25 = sshll.u32 %s704_s11, 4  ;;  %s373_s25 = int_to_ptr.hbm [resolvable:$true] %s372_s25 }
  0x1c   :  { %137 = vmatpush.msra.mxu0 %v112_v4  ;;  %v160_v15 = vld [vmem:[#allocation13 + $0x30] sm:$0xff]  ;;  %v159_v16 = vld [vmem:[#allocation13 + $0x28] sm:$0xff]  ;;  %v158_v17 = vld [vmem:[#allocation13 + $0x20] sm:$0xff]  ;;  %vm226_vm3 = vcmp.lt.s32.totalorder %v224_v39, %v149_v25  ;;  %109 = vst [vmem:[#allocation4] sm:$0x1] %v579_v45  ;;  %s581_s7 = smov [#allocation16]  }
  0x1d   :  { %176 = vmatpush.msra.mxu1 %v167_v6  ;;  %v157_v18 = vld [vmem:[#allocation13 + $0x18] sm:$0xff]  ;;  %v156_v19 = vld [vmem:[#allocation13 + $0x10] sm:$0xff]  ;;  %v155_v20 = vld [vmem:[#allocation13 + $0x8] sm:$0xff]  ;;  %s359_s28 = sshll.u32 %s581_s7, 4  ;;  %s361_s12 = sshll.u32 %s703_s10, 4  ;;  %s360_s28 = int_to_ptr.vmem [resolvable:$true] %s359_s28  ;;  %s362_s12 = int_to_ptr.hbm [resolvable:$true] %s361_s12 }
  0x1e   :  { %138 = vmatpush.msra.mxu0 %v111_v7  ;;  %v154_v21 = vld [vmem:[#allocation13] sm:$0xff]  ;;  %v407_v23 = vld [vmem:[%s696_s3] ss:$0 sm:$0xff]  ;;  %v196_v30 = vld [vmem:[#allocation7] sm:$0x1] }
  0x1f   :  { %389 = vmatmul.msk.f32.vlgmr.msra.gmra.mxu0 %vm119_vm0, %v110_v8  ;;  %177 = vmatpush.msra.mxu1 %v166_v9  ;;  %v408_v32 = vld [vmem:[%s698_s5] ss:$0 sm:$0xff]  ;;  %v331_v59 = vld [vmem:[#allocation14 + $0x78] sm:$0xff]  ;;  %v329_v61 = vld [vmem:[#allocation14 + $0x68] sm:$0xff]  ;;  %s580_s5 = smov [#allocation17]  }
  0x20   :  { %199 = vperm.xlu0 %404, %v196_v30   ;;  %v195_v36 = vld [vmem:[%s699_s6] sm:$0x1]  ;;  %333 = vmatpush.msra.mxu3 %v331_v59  ;;  %v328_v0 = vld [vmem:[#allocation14 + $0x60] sm:$0xff]  ;;  %v327_v2 = vld [vmem:[#allocation14 + $0x58] sm:$0xff]  ;;  %s370_s6 = sshll.u32 %s580_s5, 4  ;;  %s371_s6 = int_to_ptr.vmem [resolvable:$true] %s370_s6 }
  0x21   :  { %178 = vmatpush.msra.mxu1 %v165_v10  ;;  %v230_v46 = vld [vmem:[#allocation2] sm:$0x1]  ;;  %v325_v4 = vld [vmem:[#allocation14 + $0x48] sm:$0xff]  ;;  %v324_v6 = vld [vmem:[#allocation14 + $0x40] sm:$0xff] }
  0x22   :  { %v247_v58 = vld [vmem:[#allocation3] sm:$0x1]  ;;  %v323_v9 = vld [vmem:[#allocation14 + $0x38] sm:$0xff]  ;;  %v316_v30 = vld [vmem:[#allocation14] sm:$0xff] }
  0x23   :  { %179 = vmatpush.msra.mxu1 %v164_v11  ;;  %v330_v60 = vld [vmem:[#allocation14 + $0x70] sm:$0xff] }
  0x24   :  { %334 = vmatpush.msra.mxu3 %v330_v60  ;;  %v326_v3 = vld [vmem:[#allocation14 + $0x50] sm:$0xff] }
  0x25   :  { %180 = vmatpush.msra.mxu1 %v163_v12  ;;  %v255_v10 = vld [vmem:[#allocation4] sm:$0x1] }
  0x26   :  { %335 = vmatpush.msra.mxu3 %v329_v61  ;;  %v322_v11 = vld [vmem:[#allocation14 + $0x30] sm:$0xff] }
  0x27   :  { %181 = vmatpush.msra.mxu1 %v162_v13  ;;  %v321_v13 = vld [vmem:[#allocation14 + $0x28] sm:$0xff] }
  0x28   :  { %336 = vmatpush.msra.mxu3 %v328_v0 }
  0x29   :  { %182 = vmatpush.msra.mxu1 %v161_v14 }
  0x2a   :  { %337 = vmatpush.msra.mxu3 %v327_v2 }
  0x2b   :  { %183 = vmatpush.msra.mxu1 %v160_v15 }
  0x2c   :  { %338 = vmatpush.msra.mxu3 %v326_v3 }
  0x2d   :  { %184 = vmatpush.msra.mxu1 %v159_v16  ;;  %v320_v16 = vld [vmem:[#allocation14 + $0x20] sm:$0xff] }
  0x2e   :  { %339 = vmatpush.msra.mxu3 %v325_v4 }
  0x2f   :  { %185 = vmatpush.msra.mxu1 %v158_v17 }
  0x30   :  { %340 = vmatpush.msra.mxu3 %v324_v6 }
  0x31   :  { %186 = vmatpush.msra.mxu1 %v157_v18 }
  0x32   :  { %341 = vmatpush.msra.mxu3 %v323_v9 }
  0x33   :  { %187 = vmatpush.msra.mxu1 %v156_v19  ;;  %v319_v19 = vld [vmem:[#allocation14 + $0x18] sm:$0xff] }
  0x34   :  { %342 = vmatpush.msra.mxu3 %v322_v11 }
  0x35   :  { %188 = vmatpush.msra.mxu1 %v155_v20 }
  0x36   :  { %343 = vmatpush.msra.mxu3 %v321_v13 }
  0x37   :  { %189 = vmatpush.msra.mxu1 %v154_v21  ;;  %v318_v21 = vld [vmem:[#allocation14 + $0x10] sm:$0xff] }
  0x38   :  { %344 = vmatpush.msra.mxu3 %v320_v16 }
  0x3a   :  { %345 = vmatpush.msra.mxu3 %v319_v19 }
  0x3c   :  { %346 = vmatpush.msra.mxu3 %v318_v21 }
  0x92   :  { %v200_v38 = vpop.permute.xlu0 %199 }
  0x93   :  { %v202_v40 = vperm.slane %v200_v38, 0 }
  0x9c   :  { %v140_v26 = vpop.f32.mrf.mxu0 }
  0x9d   :  { %v141_v27 = vadd.f32 %v407_v23, %v140_v26 }
  0x9f   :  { %v143_v29 = vmax.f32 %v141_v27, 0.0 }
  0xa1   :  { %390 = vmatmul.msk.f32.vlgmr.msra.gmra.mxu1 %vm663_vm1, %v143_v29 }
 0x11e   :  { %v191_v33 = vpop.f32.mrf.mxu1 }
 0x11f   :  { %v192_v34 = vadd.f32 %v408_v32, %v191_v33 }
 0x121   :  { %409 = vtanh.f32 %v192_v34 }
 0x127   :  { %v410_v35 = vpop.eup %409 }
 0x128   :  { %218 = vmatpush.xpose.msra.mxu2 %v410_v35  ;;  %v332_v35 = vld [vmem:[%s702_s9] sm:$0x1] }
 0x12b   :  { %219 = vmatmul.f32.vlgmr.msra.gmra.mxu2 %v195_v36 }
 0x12c   :  { %391 = vmatpush.msk.msrb.mxu2 %vm663_vm1, %v143_v29  ;;  %v317_v29 = vld [vmem:[#allocation14 + $0x8] sm:$0xff] }
 0x12d   :  { %347 = vmatpush.msra.mxu3 %v317_v29 }
 0x12f   :  { %348 = vmatpush.msra.mxu3 %v316_v30 }
 0x1ae   :  { %v220_v41 = vpop.f32.mrf.mxu2 }
 0x1af   :  { %v221_v42 = vadd.f32 %v220_v41, %v202_v40 }
 0x1b1   :  { %v227_v43 = vsel %vm226_vm3, %v221_v42, -1e+30 }
 0x1b2   :  { %v231_v44 = vsel %vm228_vm4, %v227_v43, -inf  ;;  %229 = vst.msk [vmem:[#allocation17] sm:$0x1] %vm228_vm4, %v227_v43 }
 0x1b3   :  { %232 = vmax.xlane.f32.xlu0 %v231_v44  ;;  %375 = dma.vmem_to_hbm [thread:$0]  %s371_s6, 16, %s373_s25, [#allocation18]  }
 0x226   :  { %v233_v47 = vpop.xlane.xlu0 %232 }
 0x227   :  { %v234_v48 = vmax.f32 %v230_v46, %v233_v47 }
 0x229   :  { %v235_v49 = vsub.f32 %v230_v46, %v234_v48  ;;  %289 = vst.msk [vmem:[#allocation2] sm:$0x1] %vm106_vm2, %v234_v48  ;;  %240 = vperm.xlu1 %405, %v234_v48  }
 0x22b   :  { %v236_v50 = vmul.f32 1.442695, %v235_v49 }
 0x22d   :  { %411 = vpow2.f32 %v236_v50 }
 0x233   :  { %v412_v51 = vpop.eup %411 }
 0x234   :  { %258 = vperm.xlu2 %406, %v412_v51   ;;  %v248_v62 = vmul.f32 %v412_v51, %v247_v58 }
 0x28e   :  { %v259_v5 = vpop.permute.xlu2 %258 }
 0x28f   :  { %v261_v7 = vperm.slane %v259_v5, 0 }
 0x291   :  { %v262_v12 = vmul.f32 %v261_v7, %v255_v10 }
 0x29b   :  { %v241_v52 = vpop.permute.xlu1 %240 }
 0x29c   :  { %v243_v53 = vperm.slane %v241_v52, 0 }
 0x29e   :  { %v244_v54 = vsub.f32 %v227_v43, %v243_v53 }
 0x2a0   :  { %v245_v55 = vmul.f32 1.442695, %v244_v54 }
 0x2a2   :  { %413 = vpow2.f32 %v245_v55 }
 0x2a8   :  { %v414_v56 = vpop.eup %413 }
 0x2a9   :  { %392 = vmatmul.msk.f32.vlgmr.msrb.gmra.mxu2 %vm263_vm5, %v414_v56  ;;  %v249_v57 = vsel %vm228_vm4, %v414_v56, 0.0 }
 0x2aa   :  { %250 = vadd.xlane.f32.xlu1 %v249_v57 }
 0x31d   :  { %v251_v63 = vpop.xlane.xlu1 %250 }
 0x31e   :  { %v252_v1 = vadd.f32 %v251_v63, %v248_v62 }
 0x320   :  { %254 = vst.msk [vmem:[#allocation3] sm:$0x1] %vm106_vm2, %v252_v1 }
 0x327   :  { %v294_v8 = vld [vmem:[#allocation3] sm:$0x1] }
 0x328   :  { %415 = vrcp.f32 %v294_v8  ;;  %v306_v22 = vand.u32 2147483648, %v294_v8  ;;  %v304_v24 = vand.u32 2147483647, %v294_v8  ;;  %vm300_vm7 = vweird.f32 %v294_v8 }
 0x32a   :  { %v307_v26 = vor.u32 1.1754944e-38, %v306_v22  ;;  %vm305_vm9 = vcmp.eq.f32.partialorder %v304_v24, 8.507059e+37 }
 0x32c   :  { %v284_v14 = vpop.f32.mrf.mxu2 }
 0x32d   :  { %v287_v15 = vadd.f32 %v284_v14, %v262_v12 }
 0x32e   :  { %v416_v17 = vpop.eup %415 }
 0x32f   :  { %288 = vst [vmem:[#allocation4] sm:$0x1] %v287_v15  ;;  %v296_v18 = vmul.f32 %v416_v17, %v294_v8  ;;  %vm301_vm6 = vweird.f32 %v416_v17 }
 0x330   :  { %vm302_vm8 = vmor %vm300_vm7, %vm301_vm6 }
 0x331   :  { %v297_v20 = vsub.f32 1.0, %v296_v18 }
 0x333   :  { %v298_v23 = vmul.f32 %v416_v17, %v297_v20 }
 0x335   :  { %v299_v25 = vadd.f32 %v416_v17, %v298_v23 }
 0x336   :  { %v293_v33 = vld [vmem:[#allocation4] sm:$0x1] }
 0x337   :  { %v303_v27 = vsel %vm302_vm8, %v416_v17, %v299_v25 }
 0x338   :  { %v308_v28 = vsel %vm305_vm9, %v307_v26, %v303_v27 }
 0x339   :  { %311 = vperm.xlu2 %406, %v308_v28  }
 0x393   :  { %v312_v31 = vpop.permute.xlu2 %311 }
 0x394   :  { %v314_v32 = vperm.slane %v312_v31, 0 }
 0x396   :  { %v315_v34 = vmul.f32 %v314_v32, %v293_v33 }
 0x398   :  { %349 = vmatmul.f32.vlgmr.msra.gmra.mxu3 %v315_v34 }
 0x41b   :  { %v350_v36 = vpop.f32.mrf.mxu3 }
 0x41c   :  { %v351_v37 = vadd.f32 %v350_v36, %v332_v35 }
 0x41e   :  { %353 = vst [vmem:[#allocation16] sm:$0x1] %v351_v37 }
 0x41f   :  { %364 = dma.vmem_to_hbm [thread:$0]  %s360_s28, 16, %s362_s12, [#allocation10]  }
 0x420   :  { %567 = dma.done.wait [#allocation10], 16  }
 0x421   :  { %568 = vsyncadd [#allocation10], 4294967280 }
 0x422   :  { %569 = dma.done.wait [#allocation18], 16  }
 0x423   :  { %570 = vsyncadd [#allocation18], 4294967280 }
 0x424   :  { %384 = vsyncpa [#allocation9], 1 }
 0x425   :  { %385 = vsyncpa [#allocation12], 1 }
 0x426   :  { %386 = vsyncpa [#allocation15], 1 }
 0x427   :  { %387 = vsyncpa [#allocation10], 1 }
 0x428   :  { %388 = vsyncpa [#allocation18], 1 }

</bundles_post_ra>
